<compile_context>
chip_gen: v7x
topology: tpu7x:2x2x1
jax: 0.10.0
libtpu: 0.0.40
codegen_flags: <defaults>
</compile_context>

<pallas_src>
import functools

import jax
import jax.numpy as jnp
from jax import lax
from jax.experimental import pallas as pl
from jax.experimental.pallas import tpu as pltpu

EPS = 1e-5
TM_MAX = 512  # rows per tile; 2 x double-buffered (TM x Kpad + TM x Cpad) f32 << 24 MiB


def _round_up(x, m):
    return (x + m - 1) // m * m


def _bn_scale_shift(gamma, beta, mean, var):
    scale = gamma / jnp.sqrt(var + EPS)
    shift = beta - mean * scale
    return scale, shift


# ----------------------------- Pallas kernel --------------------------------
def _fused_gemm_bias_kernel(p_ref, w_ref, b_ref, o_ref):
    # Single MXU matmul over the fused (3x3 + center-folded 1x1, BN-folded) weight,
    # plus one bias broadcast. f32 accumulation.
    acc = jnp.dot(p_ref[...], w_ref[...], preferred_element_type=jnp.float32)
    o_ref[...] = (acc + b_ref[...]).astype(o_ref.dtype)


# ----------------------------- forward wrapper -------------------------------
@jax.jit
def downstream_forward(x_nchw, params):
    """Forward pass of Downstream. x_nchw: (N, Cin, H, W) float32 -> (N, Cout, OH, OW)."""
    N, Cin, H, W = x_nchw.shape
    Cout = params["w3"].shape[0]
    OH = (H + 2 - 3) // 2 + 1
    OW = (W + 2 - 3) // 2 + 1

    # ---- self.norm(x) is computed and discarded in the original forward; in eval
    #      mode it has no side effects, so it is elided here (zero-risk cleanup).

    # ---- glue: NCHW -> NHWC, im2col for the 3x3/stride-2/pad-1 conv.
    x_nhwc = jnp.transpose(x_nchw, (0, 2, 3, 1))                      # (N, H, W, Cin)
    xp = jnp.pad(x_nhwc, ((0, 0), (1, 1), (1, 1), (0, 0)))            # pad=1
    cols = []
    for kh in range(3):
        for kw in range(3):
            cols.append(xp[:, kh:kh + 2 * OH:2, kw:kw + 2 * OW:2, :])  # (N, OH, OW, Cin)
    patches3 = jnp.concatenate(cols, axis=-1).reshape(N * OH * OW, 9 * Cin)

    # ---- fold both branches + BN affines into a single weight matrix and bias.
    s3, b3 = _bn_scale_shift(params["bn3_gamma"], params["bn3_beta"],
                             params["bn3_mean"], params["bn3_var"])
    s1, b1 = _bn_scale_shift(params["bn1_gamma"], params["bn1_beta"],
                             params["bn1_mean"], params["bn1_var"])
    # torch OIHW -> (kh, kw, Cin, Cout) -> (9*Cin, Cout), matching patch layout.
    w3_mat = jnp.transpose(params["w3"], (2, 3, 1, 0)).reshape(9 * Cin, Cout)
    w1_mat = jnp.transpose(params["w1"][:, :, 0, 0], (1, 0))           # (Cin, Cout)
    w_fused = w3_mat * s3[None, :]
    # 1x1/stride-2 tap == center tap (kh=1, kw=1) -> rows [4*Cin, 5*Cin).
    w_fused = w_fused.at[4 * Cin:5 * Cin, :].add(w1_mat * s1[None, :])
    bias = (b3 + b1)                                                   # (Cout,)

    # ---- pad to MXU / lane-dense granularity.
    M = N * OH * OW
    K3 = 9 * Cin
    K_pad = _round_up(K3, 128)
    C_pad = _round_up(Cout, 128)
    TM = min(TM_MAX, _round_up(M, 8))
    M_pad = _round_up(M, TM)

    patches_p = jnp.zeros((M_pad, K_pad), jnp.float32).at[:M, :K3].set(patches3)
    w_p = jnp.zeros((K_pad, C_pad), jnp.float32).at[:K3, :Cout].set(w_fused)
    b_p = jnp.zeros((1, C_pad), jnp.float32).at[0, :Cout].set(bias)

    grid = (M_pad // TM,)
    out_flat = pl.pallas_call(
        _fused_gemm_bias_kernel,
        out_shape=jax.ShapeDtypeStruct((M_pad, C_pad), jnp.float32),
        grid=grid,
        in_specs=[
            pl.BlockSpec((TM, K_pad), lambda i: (i, 0)),   # patches tile
            pl.BlockSpec((K_pad, C_pad), lambda i: (0, 0)),  # fused weight (resident)
            pl.BlockSpec((1, C_pad), lambda i: (0, 0)),      # fused bias (resident)
        ],
        out_specs=pl.BlockSpec((TM, C_pad), lambda i: (i, 0)),
        compiler_params=pltpu.CompilerParams(
            dimension_semantics=("parallel",),
        ),
    )(patches_p, w_p, b_p)

    out = out_flat[:M, :Cout].reshape(N, OH, OW, Cout)
    return jnp.transpose(out, (0, 3, 1, 2))  # back to NCHW


# ----------------------------- reference (pure JAX) --------------------------
def downstream_reference(x_nchw, params):
    s3, b3 = _bn_scale_shift(params["bn3_gamma"], params["bn3_beta"],
                             params["bn3_mean"], params["bn3_var"])
    s1, b1 = _bn_scale_shift(params["bn1_gamma"], params["bn1_beta"],
                             params["bn1_mean"], params["bn1_var"])
    dn = ("NCHW", "OIHW", "NCHW")
    out3 = lax.conv_general_dilated(x_nchw, params["w3"], (2, 2),
                                    ((1, 1), (1, 1)), dimension_numbers=dn)
    out1 = lax.conv_general_dilated(x_nchw, params["w1"], (2, 2),
                                    ((0, 0), (0, 0)), dimension_numbers=dn)
    out3 = out3 * s3[None, :, None, None] + b3[None, :, None, None]
    out1 = out1 * s1[None, :, None, None] + b1[None, :, None, None]
    return out3 + out1


# ----------------------------- deterministic init ----------------------------
def init_params(key, in_dim, out_dim):
    ks = jax.random.split(key, 8)
    p = {
        # Downstream.norm = BatchNorm2d(in_dim) (output discarded in forward; unused here)
        "norm_gamma": jax.random.normal(ks[0], (in_dim,)) * 0.1 + 1.0,
        "norm_beta": jax.random.normal(ks[1], (in_dim,)) * 0.1,
        "norm_mean": jnp.zeros((in_dim,)),
        "norm_var": jnp.ones((in_dim,)),
        # RepUnit branch 1: 3x3 conv (stride 2, pad 1) + BN
        "w3": jax.random.normal(ks[2], (out_dim, in_dim, 3, 3)) * 0.1,
        "bn3_gamma": jax.random.normal(ks[3], (out_dim,)) * 0.1 + 1.0,
        "bn3_beta": jax.random.normal(ks[4], (out_dim,)) * 0.1,
        "bn3_mean": jax.random.normal(ks[5], (out_dim,)) * 0.05,
        "bn3_var": jnp.abs(jax.random.normal(ks[6], (out_dim,))) * 0.1 + 1.0,
        # RepUnit branch 2: 1x1 conv (stride 2) + BN
        "w1": jax.random.normal(ks[7], (out_dim, in_dim, 1, 1)) * 0.1,
        "bn1_gamma": jnp.ones((out_dim,)) * 0.9,
        "bn1_beta": jnp.ones((out_dim,)) * 0.05,
        "bn1_mean": jnp.zeros((out_dim,)),
        "bn1_var": jnp.ones((out_dim,)) * 1.1,
    }
    return jax.tree_util.tree_map(lambda a: a.astype(jnp.float32), p)


if __name__ == "__main__":
    key = jax.random.PRNGKey(0)
    k_x, k_p = jax.random.split(key)

    N, Cin, Cout, H, W = 2, 8, 16, 16, 16
    x = jax.random.normal(k_x, (N, Cin, H, W), dtype=jnp.float32)
    params = init_params(k_p, Cin, Cout)

    out = downstream_forward(x, params)
    out = jax.block_until_ready(out)

    ref = downstream_reference(x, params)
    assert out.shape == (N, Cout, H // 2, W // 2), out.shape
    err = float(jnp.max(jnp.abs(out - ref)))
    assert jnp.allclose(out, ref, atol=1e-4, rtol=1e-4), err

    print("KERNEL_OK")
</pallas_src>

<mosaic_0001>
module attributes {stable_mosaic.version = 11 : i64} {
  func.func @_fused_gemm_bias_kernel(%arg0: i32, %arg1: memref<128x128xf32, #tpu.memory_space<vmem>>, %arg2: memref<128x128xf32, #tpu.memory_space<vmem>>, %arg3: memref<1x128xf32, #tpu.memory_space<vmem>>, %arg4: memref<128x128xf32, #tpu.memory_space<vmem>>) attributes {dimension_semantics = [#tpu.dimension_semantics<parallel>], iteration_bounds = array<i64: 1>, scalar_prefetch = 0 : i64, scratch_operands = 0 : i64, tpu.core_type = #tpu.core_type<tc>, window_params = [{transform_indices = @transform_0, window_bounds = array<i64: 128, 128>}, {pipeline_mode = #tpu.pipeline_mode<synchronous>, transform_indices = @transform_1, window_bounds = array<i64: 128, 128>}, {pipeline_mode = #tpu.pipeline_mode<synchronous>, transform_indices = @transform_2, window_bounds = array<i64: 1, 128>}, {transform_indices = @transform_3, window_bounds = array<i64: 128, 128>}]} {
    %c0 = arith.constant 0 : index
    %c0_0 = arith.constant 0 : index
    %0 = vector.load %arg1[%c0, %c0_0] : memref<128x128xf32, #tpu.memory_space<vmem>>, vector<128x128xf32>
    %c0_1 = arith.constant 0 : index
    %c0_2 = arith.constant 0 : index
    %1 = vector.load %arg2[%c0_1, %c0_2] : memref<128x128xf32, #tpu.memory_space<vmem>>, vector<128x128xf32>
    %cst = arith.constant dense<0.000000e+00> : vector<128x128xf32>
    %2 = tpu.matmul %0, %1, %cst {dimension_numbers = #tpu.dot_dimension_numbers<[1], [0], [0], [1], [0, 0, 1, 1], [], []>} : vector<128x128xf32>, vector<128x128xf32>, vector<128x128xf32> -> vector<128x128xf32>
    %c0_3 = arith.constant 0 : index
    %c0_4 = arith.constant 0 : index
    %3 = vector.load %arg3[%c0_3, %c0_4] : memref<1x128xf32, #tpu.memory_space<vmem>>, vector<1x128xf32>
    %4 = vector.broadcast %3 : vector<1x128xf32> to vector<128x128xf32>
    %5 = arith.addf %2, %4 : vector<128x128xf32>
    %c0_5 = arith.constant 0 : index
    %c0_6 = arith.constant 0 : index
    %6 = vector.load %arg4[%c0_5, %c0_6] : memref<128x128xf32, #tpu.memory_space<vmem>>, vector<128x128xf32>
    tpu.vector_store %arg4[%c0_5, %c0_6], %5 {strides = array<i32>} : memref<128x128xf32, #tpu.memory_space<vmem>>, vector<128x128xf32>,
    return
  }
  func.func @transform_0(%arg0: i32) -> (i32, i32) {
    %c0_i32 = arith.constant 0 : i32
    %c0_i32_0 = arith.constant 0 : i32
    return %arg0, %c0_i32 : i32, i32
  }
  func.func @transform_1(%arg0: i32) -> (i32, i32) {
    %c0_i32 = arith.constant 0 : i32
    %c0_i32_0 = arith.constant 0 : i32
    %c0_i32_1 = arith.constant 0 : i32
    return %c0_i32, %c0_i32_0 : i32, i32
  }
  func.func @transform_2(%arg0: i32) -> (i32, i32) {
    %c0_i32 = arith.constant 0 : i32
    %c0_i32_0 = arith.constant 0 : i32
    %c0_i32_1 = arith.constant 0 : i32
    return %c0_i32, %c0_i32_0 : i32, i32
  }
  func.func @transform_3(%arg0: i32) -> (i32, i32) {
    %c0_i32 = arith.constant 0 : i32
    %c0_i32_0 = arith.constant 0 : i32
    return %arg0, %c0_i32 : i32, i32
  }
}

</mosaic_0001>

<bundles_post_ra>
// kernel: downstream_forward.1
= control target key start
LH: loop header
LB: loop body
LE: loop exit
PB: predicated region body
PF: predicated region fallthrough
CT: control target
= control target key end

     0   :  { %s529_s0 = inlined_call_operand.vmem [shape: f32[128,128], index: 0, kind: input, shape index: {}]   ;;  %s530_s1 = inlined_call_operand.vmem [shape: f32[128,128], index: 1, kind: input, shape index: {}]   ;;  %s531_s2 = inlined_call_operand.vmem [shape: f32[1,128], index: 2, kind: input, shape index: {}]   ;;  %s532_s3 = inlined_call_operand.hbm [shape: f32[128,128], index: 3, kind: output, shape index: {}]  }
   0x1   :  { %v31_v0 = vld [vmem:[%s530_s1] sm:$0xff]  ;;  %v32_v1 = vld [vmem:[%s530_s1 + $0x8] sm:$0xff]  ;;  %v33_v2 = vld [vmem:[%s530_s1 + $0x10] sm:$0xff] }
   0x2   :  { %v320_v3 = vpack.c.bf16 %v32_v1, %v31_v0  ;;  %v34_v4 = vld [vmem:[%s530_s1 + $0x18] sm:$0xff]  ;;  %v35_v6 = vld [vmem:[%s530_s1 + $0x20] sm:$0xff]  ;;  %v36_v7 = vld [vmem:[%s530_s1 + $0x28] sm:$0xff] }
   0x3   :  { %v324_v5 = vpack.c.bf16 %v34_v4, %v33_v2  ;;  %v328_v8 = vpack.c.bf16 %v36_v7, %v35_v6  ;;  %v15_v9 = vld [vmem:[%s529_s0] sm:$0xff]  ;;  %v37_v11 = vld [vmem:[%s530_s1 + $0x30] sm:$0xff]  ;;  %v38_v12 = vld [vmem:[%s530_s1 + $0x38] sm:$0xff] }
   0x4   :  { %321 = vmatprep.subr.bf16.mxu0 %v320_v3  ;;  %352 = vmatprep.subr.bf16.mxu1 %v320_v3  ;;  %v23_v10 = vld [vmem:[%s529_s0 + $0x40] sm:$0xff]  ;;  %v332_v13 = vpack.c.bf16 %v38_v12, %v37_v11  ;;  %v40_v15 = vld [vmem:[%s530_s1 + $0x48] sm:$0xff] }
   0x5   :  { %323 = vmatpush3.bf16.msra.mxu0 %v320_v3  ;;  %360 = vmatpush3.bf16.msra.mxu1 %v320_v3  ;;  %v39_v14 = vld [vmem:[%s530_s1 + $0x40] sm:$0xff] }
   0x6   :  { %325 = vmatprep.subr.bf16.mxu0 %v324_v5  ;;  %353 = vmatprep.subr.bf16.mxu1 %v324_v5 }
   0x7   :  { %296 = vmatprep.mubr.f32.mxu0 %v15_v9  ;;  %308 = vmatprep.mubr.f32.mxu1 %v23_v10 }
   0x9   :  { %327 = vmatpush3.bf16.msra.mxu0 %v324_v5  ;;  %361 = vmatpush3.bf16.msra.mxu1 %v324_v5 }
   0xa   :  { %329 = vmatprep.subr.bf16.mxu0 %v328_v8  ;;  %354 = vmatprep.subr.bf16.mxu1 %v328_v8 }
   0xb   :  { %8 = vsyncpa [#allocation3], 0  ;;  %v336_v16 = vpack.c.bf16 %v40_v15, %v39_v14  ;;  %v41_v17 = vld [vmem:[%s530_s1 + $0x50] sm:$0xff]  ;;  %v42_v18 = vld [vmem:[%s530_s1 + $0x58] sm:$0xff] }
   0xc   :  { %v340_v19 = vpack.c.bf16 %v42_v18, %v41_v17  ;;  %v43_v20 = vld [vmem:[%s530_s1 + $0x60] sm:$0xff]  ;;  %v44_v21 = vld [vmem:[%s530_s1 + $0x68] sm:$0xff]  ;;  %v45_v23 = vld [vmem:[%s530_s1 + $0x70] sm:$0xff] }
   0xd   :  { %331 = vmatpush3.bf16.msra.mxu0 %v328_v8  ;;  %362 = vmatpush3.bf16.msra.mxu1 %v328_v8  ;;  %v344_v22 = vpack.c.bf16 %v44_v21, %v43_v20  ;;  %v46_v24 = vld [vmem:[%s530_s1 + $0x78] sm:$0xff]  ;;  %v16_v26 = vld [vmem:[%s529_s0 + $0x8] sm:$0xff]  ;;  %v17_v28 = vld [vmem:[%s529_s0 + $0x10] sm:$0xff] }
   0xe   :  { %333 = vmatprep.subr.bf16.mxu0 %v332_v13  ;;  %355 = vmatprep.subr.bf16.mxu1 %v332_v13  ;;  %v348_v25 = vpack.c.bf16 %v46_v24, %v45_v23  ;;  %v24_v27 = vld [vmem:[%s529_s0 + $0x48] sm:$0xff]  ;;  %v25_v29 = vld [vmem:[%s529_s0 + $0x50] sm:$0xff]  ;;  %v18_v30 = vld [vmem:[%s529_s0 + $0x18] sm:$0xff] }
   0xf   :  { %v26_v31 = vld [vmem:[%s529_s0 + $0x58] sm:$0xff]  ;;  %v19_v32 = vld [vmem:[%s529_s0 + $0x20] sm:$0xff]  ;;  %v20_v34 = vld [vmem:[%s529_s0 + $0x28] sm:$0xff] }
  0x10   :  { %v27_v33 = vld [vmem:[%s529_s0 + $0x60] sm:$0xff]  ;;  %v28_v35 = vld [vmem:[%s529_s0 + $0x68] sm:$0xff]  ;;  %v21_v36 = vld [vmem:[%s529_s0 + $0x30] sm:$0xff] }
  0x11   :  { %335 = vmatpush3.bf16.msra.mxu0 %v332_v13  ;;  %363 = vmatpush3.bf16.msra.mxu1 %v332_v13  ;;  %v29_v37 = vld [vmem:[%s529_s0 + $0x70] sm:$0xff]  ;;  %v22_v38 = vld [vmem:[%s529_s0 + $0x38] sm:$0xff]  ;;  %v231_v40 = vld [vmem:[%s531_s2] ss:$0 sm:$0xff] }
  0x12   :  { %337 = vmatprep.subr.bf16.mxu0 %v336_v16  ;;  %356 = vmatprep.subr.bf16.mxu1 %v336_v16  ;;  %v30_v39 = vld [vmem:[%s529_s0 + $0x78] sm:$0xff]  ;;  %s395_s0 = smov [#allocation2]  }
  0x13   :  { %s220_s2 = sshll.u32 %s395_s0, 4  ;;  %s221_s2 = int_to_ptr.vmem [resolvable:$true] %s220_s2 }
  0x14   :  { %s371_s23 = scalar_lea.vmem %s221_s2, 2048  ;;  %p376_p1 = scmp.lt.s32.totalorder %s221_s2, %s221_s2 }
  0x15   :  { %339 = vmatpush3.bf16.msra.mxu0 %v336_v16  ;;  %364 = vmatpush3.bf16.msra.mxu1 %v336_v16  ;;  %p372_p0 = scmp.ne.s32.totalorder %s221_s2, %s371_s23  ;;  %p377_p2 = scmp.lt.s32.totalorder %s371_s23, %s371_s23 }
  0x16   :  { %341 = vmatprep.subr.bf16.mxu0 %v340_v19  ;;  %357 = vmatprep.subr.bf16.mxu1 %v340_v19 }
  0x17   :  { %p378_p3 = por %p377_p2, %p376_p1 }
  0x19   :  { %343 = vmatpush3.bf16.msra.mxu0 %v340_v19  ;;  %365 = vmatpush3.bf16.msra.mxu1 %v340_v19  ;;  %p379_p4 = pnand %p378_p3, %p372_p0 }
  0x1a   :  { %345 = vmatprep.subr.bf16.mxu0 %v344_v22  ;;  %358 = vmatprep.subr.bf16.mxu1 %v344_v22 }
  0x1d   :  { %347 = vmatpush3.bf16.msra.mxu0 %v344_v22  ;;  %366 = vmatpush3.bf16.msra.mxu1 %v344_v22 }
  0x1e   :  { %349 = vmatprep.subr.bf16.mxu0 %v348_v25  ;;  %359 = vmatprep.subr.bf16.mxu1 %v348_v25 }
  0x21   :  { %351 = vmatpush3.bf16.msra.mxu0 %v348_v25  ;;  %367 = vmatpush3.bf16.msra.mxu1 %v348_v25 }
  0x24   :  { %297 = vmatmul.mubr.f32.vlgmr.msra.gmra.mrb[0].mxu0 %v16_v26  ;;  %309 = vmatmul.mubr.f32.vlgmr.msra.gmra.mrb[0].mxu1 %v24_v27 }
  0x25   :  { %299 = vmatprep.mubr.f32.mxu0 %v17_v28  ;;  %311 = vmatprep.mubr.f32.mxu1 %v25_v29 }
  0x28   :  { %300 = vmatmul.mubr.f32.gmra.mrb[2].mxu0 %v18_v30  ;;  %312 = vmatmul.mubr.f32.gmra.mrb[2].mxu1 %v26_v31 }
  0x29   :  { %302 = vmatprep.mubr.f32.mxu0 %v19_v32  ;;  %314 = vmatprep.mubr.f32.mxu1 %v27_v33 }
  0x2c   :  { %303 = vmatmul.mubr.f32.gmra.mrb[4].mxu0 %v20_v34  ;;  %315 = vmatmul.mubr.f32.gmra.mrb[4].mxu1 %v28_v35 }
  0x2d   :  { %305 = vmatprep.mubr.f32.mxu0 %v21_v36  ;;  %317 = vmatprep.mubr.f32.mxu1 %v29_v37 }
  0x30   :  { %306 = vmatmul.mubr.f32.gmra.mrb[6].mxu0 %v22_v38  ;;  %318 = vmatmul.mubr.f32.gmra.mrb[6].mxu1 %v30_v39 }
  0xf7   :  { %v298_v41 = vpop.f32.mrb[0].mxu0  ;;  %v310_v42 = vpop.f32.mrb[0].mxu1 }
  0xf8   :  { %v126_v43 = vadd.f32 %v298_v41, %v231_v40  ;;  %v166_v44 = vadd.f32 %v310_v42, %v231_v40  ;;  %v120_v45 = vpop.f32.mrb[1].mxu0  ;;  %v160_v46 = vpop.f32.mrb[1].mxu1 }
  0xf9   :  { %v121_v47 = vadd.f32 %v231_v40, %v120_v45  ;;  %v161_v48 = vadd.f32 %v231_v40, %v160_v46 }
  0xfa   :  { %200 = vst [vmem:[#allocation2 + $0x8] sm:$0xff] %v126_v43  ;;  %208 = vst [vmem:[#allocation2 + $0x48] sm:$0xff] %v166_v44 }
  0xfb   :  { %199 = vst [vmem:[#allocation2] sm:$0xff] %v121_v47  ;;  %207 = vst [vmem:[#allocation2 + $0x40] sm:$0xff] %v161_v48  ;;  %v301_v49 = vpop.f32.mrb[2].mxu0  ;;  %v313_v50 = vpop.f32.mrb[2].mxu1 }
  0xfc   :  { %v136_v51 = vadd.f32 %v301_v49, %v231_v40  ;;  %v176_v52 = vadd.f32 %v313_v50, %v231_v40  ;;  %v130_v53 = vpop.f32.mrb[3].mxu0  ;;  %v170_v54 = vpop.f32.mrb[3].mxu1 }
  0xfd   :  { %v131_v55 = vadd.f32 %v231_v40, %v130_v53  ;;  %v171_v56 = vadd.f32 %v231_v40, %v170_v54 }
  0xfe   :  { %202 = vst [vmem:[#allocation2 + $0x18] sm:$0xff] %v136_v51  ;;  %210 = vst [vmem:[#allocation2 + $0x58] sm:$0xff] %v176_v52 }
  0xff   :  { %201 = vst [vmem:[#allocation2 + $0x10] sm:$0xff] %v131_v55  ;;  %209 = vst [vmem:[#allocation2 + $0x50] sm:$0xff] %v171_v56  ;;  %v304_v57 = vpop.f32.mrb[4].mxu0  ;;  %v316_v58 = vpop.f32.mrb[4].mxu1 }
 0x100   :  { %v146_v59 = vadd.f32 %v304_v57, %v231_v40  ;;  %v186_v60 = vadd.f32 %v316_v58, %v231_v40  ;;  %v140_v61 = vpop.f32.mrb[5].mxu0  ;;  %v180_v62 = vpop.f32.mrb[5].mxu1 }
 0x101   :  { %v141_v63 = vadd.f32 %v231_v40, %v140_v61  ;;  %v181_v0 = vadd.f32 %v231_v40, %v180_v62 }
 0x102   :  { %204 = vst [vmem:[#allocation2 + $0x28] sm:$0xff] %v146_v59  ;;  %212 = vst [vmem:[#allocation2 + $0x68] sm:$0xff] %v186_v60 }
 0x103   :  { %203 = vst [vmem:[#allocation2 + $0x20] sm:$0xff] %v141_v63  ;;  %211 = vst [vmem:[#allocation2 + $0x60] sm:$0xff] %v181_v0  ;;  %v307_v1 = vpop.f32.mrb[6].mxu0  ;;  %v319_v2 = vpop.f32.mrb[6].mxu1 }
 0x104   :  { %v156_v3 = vadd.f32 %v307_v1, %v231_v40  ;;  %v196_v4 = vadd.f32 %v319_v2, %v231_v40  ;;  %v150_v5 = vpop.f32.mrb[7].mxu0  ;;  %v190_v6 = vpop.f32.mrb[7].mxu1 }
 0x105   :  { %v151_v7 = vadd.f32 %v231_v40, %v150_v5  ;;  %v191_v8 = vadd.f32 %v231_v40, %v190_v6 }
 0x106   :  { %206 = vst [vmem:[#allocation2 + $0x38] sm:$0xff] %v156_v3  ;;  %214 = vst [vmem:[#allocation2 + $0x78] sm:$0xff] %v196_v4 }
 0x107   :  { %205 = vst [vmem:[#allocation2 + $0x30] sm:$0xff] %v151_v7  ;;  %213 = vst [vmem:[#allocation2 + $0x70] sm:$0xff] %v191_v8 }
 0x108   :  { %382 = shalt.err (!%p379_p4)
}
 0x109   :  { %s383_s25 = scalar_lea.hbm %s532_s3, 2048 }
 0x10a   :  { %p384_p5 = scmp.ne.s32.totalorder %s532_s3, %s383_s25  ;;  %p387_p6 = scmp.lt.u32.totalorder %s383_s25, %s532_s3 }
 0x10c   :  { %p389_p7 = pnand %p387_p6, %p384_p5 }
 0x10e   :  { %392 = shalt.err (!%p389_p7)
}
 0x10f   :  { %s396_s30 = smov 128   ;;  %s397_s4 = smov 8  }
 0x110   :  { %226 = dma.vmem_to_hbm [thread:$0]  %s221_s2, 2048, %s532_s3, [#allocation3], %s396_s30, %s396_s30, %s397_s4  }
 0x111   :  { %393 = dma.done.wait [#allocation3], 2048  }
 0x112   :  { %394 = vsyncadd [#allocation3], 4294965248 }
 0x113   :  { %230 = vsyncpa [#allocation3], 1 }

</bundles_post_ra>
